<compile_context>
chip_gen: v6e
topology: v6e:2x2x1
jax: 0.10.0
libtpu: 0.0.40
codegen_flags: <defaults>
</compile_context>

<pallas_src>
import functools

import jax
import jax.numpy as jnp
from jax.experimental import pallas as pl
from jax.experimental.pallas import tpu as pltpu
import numpy as np


_LANE = 128            # vreg / MXU lane width
_SUBLANE = 8           # f32 sublane height
_MAX_BATCH_TILE = 512  # rows per grid step for large batches


def _round_up(x, m):
    return (x + m - 1) // m * m


def _cdiv(a, b):
    return -(-a // b)


def _elu_f32(x):
    # nn.ELU(alpha=1.0): x if x > 0 else exp(x) - 1, computed in f32.
    # Clamp the exp argument so the untaken branch never overflows to inf.
    neg = jnp.exp(jnp.minimum(x, 0.0)) - 1.0
    return jnp.where(x > 0.0, x, neg)


def _pick_batch_tile(B, max_tile=_MAX_BATCH_TILE):
    """Fixed batch tile that minimizes garbage rows.

    Pads only to round_up(B, tile).  Prefers a 128-row (MXU M-friendly) tile
    when that costs <= ~6% extra rows, otherwise falls back to sublane (8)
    alignment.  A single grid step is used when B <= max_tile.
    """
    n_steps = _cdiv(B, max_tile)
    per_step = _cdiv(B, n_steps)
    tile8 = _round_up(per_step, _SUBLANE)
    tile128 = _round_up(per_step, _LANE)
    if n_steps * tile128 <= B + max(B // 16, 16):
        return tile128
    return tile8


# ----------------------------------------------------------------------------
# Pallas kernel
# ----------------------------------------------------------------------------
def _make_mlp_kernel(num_linears):
    """Build a kernel for an MLP with `num_linears` Linear layers.

    Ref order: x_ref, w0, b0, w1, b1, ..., out_ref
      x_ref  : bf16 (batch_tile, in_pad)
      w_i    : bf16 (in_pad_i, out_pad_i)      -- MXU-native
      b_i    : f32  (1, out_pad_i)
      out    : f32  (batch_tile, out_pad)
    Accumulation is f32; bias add + ELU are f32; activations are cast back to
    bf16 only to feed the next MXU matmul.
    """

    def kernel(*refs):
        x_ref = refs[0]
        out_ref = refs[-1]
        wb_refs = refs[1:-1]

        h = x_ref[...]                                   # bf16 activations
        for i in range(num_linears):
            w = wb_refs[2 * i][...]                      # bf16 (in, out)
            b = wb_refs[2 * i + 1][...]                  # f32  (1, out)
            acc = jnp.dot(h, w, preferred_element_type=jnp.float32)
            hf = acc + b                                 # bias add in f32
            if i < num_linears - 1:
                hf = _elu_f32(hf)                        # ELU in f32 (EUP exp)
                h = hf.astype(jnp.bfloat16)              # next MXU operand
            else:
                out_ref[...] = hf.astype(out_ref.dtype)

    return kernel


# ----------------------------------------------------------------------------
# One-time parameter preparation (OUT of the per-call hot path)
# ----------------------------------------------------------------------------
def prepare_dense_model_params(params):
    """Pad all feature dims to multiples of 128 and cast weights to bf16 once.

    params: list of (W, b) with W: (in, out), b: (out,)
    returns a tuple of (W_bf16_padded, b_f32_padded) pairs suitable for
    dense_model_forward.  Call this once per model, not per forward call.
    """
    prepared = []
    prev_out_pad = None
    for (w, b) in params:
        fi, fo = w.shape
        fi_p = _round_up(fi, _LANE)
        fo_p = _round_up(fo, _LANE)
        if prev_out_pad is not None:
            assert fi_p == prev_out_pad  # MLP chain stays consistent
        prev_out_pad = fo_p
        w_p = jnp.pad(jnp.asarray(w, jnp.bfloat16),
                      ((0, fi_p - fi), (0, fo_p - fo)))
        b_p = jnp.pad(jnp.asarray(b, jnp.float32).reshape(1, -1),
                      ((0, 0), (0, fo_p - fo)))
        prepared.append((w_p, b_p))
    return tuple(prepared)


# ----------------------------------------------------------------------------
# Forward pass wrapper
# ----------------------------------------------------------------------------
@functools.partial(
    jax.jit,
    static_argnames=("output_shape", "batch_tile", "single_buffer_weights"))
def dense_model_forward(x, prepared_params, output_shape, batch_tile=None,
                        single_buffer_weights=True):
    """Run the DenseModel MLP forward pass with a single Pallas kernel.

    x:               (B, input_size) float array
    prepared_params: output of prepare_dense_model_params(params)
    returns:         (B, *output_shape) float32 -- mean / logits of the dist
    """
    B, in_features = x.shape
    num_linears = len(prepared_params)
    out_flat = int(np.prod(output_shape))

    in_pad = prepared_params[0][0].shape[0]
    out_pad = prepared_params[-1][0].shape[1]
    assert in_features <= in_pad, "x feature dim exceeds prepared weight K"
    assert out_flat <= out_pad, "output_shape exceeds prepared weight N"

    # --- batch tiling: minimal padding, fixed tile, >=1 grid step ------------
    if batch_tile is None:
        batch_tile = _pick_batch_tile(B)
    assert batch_tile % _SUBLANE == 0
    B_pad = _round_up(B, batch_tile)
    grid = (B_pad // batch_tile,)

    # --- x: single fused pad + bf16 cast (skipped when already aligned) ------
    x_bf16 = x.astype(jnp.bfloat16)
    if B_pad != B or in_pad != in_features:
        x_bf16 = jnp.pad(x_bf16, ((0, B_pad - B), (0, in_pad - in_features)))

    # --- BlockSpecs -----------------------------------------------------------
    use_single_buffer = bool(single_buffer_weights) and hasattr(pl, "Buffered")

    def _invariant_spec(shape):
        # Weights/biases use the same block at every grid step; single-buffer
        # them so they do not double their VMEM footprint for no benefit.
        if use_single_buffer:
            return pl.BlockSpec(shape, lambda i: (0, 0),
                                pipeline_mode=pl.Buffered(1))
        return pl.BlockSpec(shape, lambda i: (0, 0))

    flat_args = []
    in_specs = [pl.BlockSpec((batch_tile, in_pad), lambda i: (i, 0))]
    for (w_p, b_p) in prepared_params:
        flat_args.append(w_p)
        in_specs.append(_invariant_spec(w_p.shape))
        flat_args.append(b_p)
        in_specs.append(_invariant_spec(b_p.shape))
    out_specs = pl.BlockSpec((batch_tile, out_pad), lambda i: (i, 0))

    # --- VMEM budget + cost estimate -----------------------------------------
    weight_bytes = sum(int(w.size) * w.dtype.itemsize +
                       int(b.size) * b.dtype.itemsize
                       for w, b in prepared_params)
    max_width = max(w.shape[1] for w, _ in prepared_params)
    weight_bufs = 1 if use_single_buffer else 2
    vmem_need = (weight_bufs * weight_bytes
                 + 2 * batch_tile * in_pad * 2       # double-buffered bf16 x tile
                 + 2 * batch_tile * out_pad * 4      # double-buffered f32 out tile
                 + 4 * batch_tile * max_width * 4)   # live f32/bf16 activation slabs

    try:
        phys_vmem = int(pltpu.get_tpu_info().vmem_capacity_bytes)
    except Exception:  # conservative fallback (v7x per-TC size)
        phys_vmem = 64 * 1024 * 1024
    vmem_budget = (phys_vmem * 3) // 4   # headroom for compiler-internal scratch

    if vmem_need > vmem_budget:
        # TODO(synk): if node_size grows past a few thousand, add K/N grid axes
        # with an f32 VMEM accumulator instead of keeping each full W resident.
        raise ValueError(
            f"DenseModel Pallas kernel needs ~{vmem_need} B of VMEM but only "
            f"{vmem_budget} B is budgeted on this TPU; shrink batch_tile or "
            "tile the weight (K/N) dimensions.")
    vmem_limit = int(min(vmem_budget, max(32 * 1024 * 1024, 2 * vmem_need)))

    flops = 2 * B_pad * sum(w.shape[0] * w.shape[1] for w, _ in prepared_params)
    transcendentals = B_pad * sum(w.shape[1] for w, _ in prepared_params[:-1])
    bytes_accessed = (B_pad * in_pad * 2 + B_pad * out_pad * 4 + weight_bytes)

    # TODO(synk): for very narrow heads (out_flat <= 4) a non-lane-padded
    # output (masked vst) or a bf16 output may win; benchmark per head.
    out = pl.pallas_call(
        _make_mlp_kernel(num_linears),
        out_shape=jax.ShapeDtypeStruct((B_pad, out_pad), jnp.float32),
        grid_spec=pltpu.PrefetchScalarGridSpec(
            num_scalar_prefetch=0,
            grid=grid,
            in_specs=in_specs,
            out_specs=out_specs,
        ),
        compiler_params=pltpu.CompilerParams(
            dimension_semantics=("parallel",),
            vmem_limit_bytes=vmem_limit,
        ),
        cost_estimate=pl.CostEstimate(
            flops=int(flops),
            transcendentals=int(transcendentals),
            bytes_accessed=int(bytes_accessed),
        ),
    )(x_bf16, *flat_args)

    # Strip batch / lane padding and reshape to the module's output shape.
    return out[:B, :out_flat].reshape((B,) + tuple(output_shape))


# ----------------------------------------------------------------------------
# Deterministic parameter init (mimics nn.Linear's U(-1/sqrt(fan_in), ...))
# ----------------------------------------------------------------------------
def init_dense_model_params(key, input_size, node_size, n_layers, output_shape):
    dims = [input_size] + [node_size] * n_layers + [int(np.prod(output_shape))]
    params = []
    for i in range(len(dims) - 1):
        fan_in, fan_out = dims[i], dims[i + 1]
        key, kw, kb = jax.random.split(key, 3)
        bound = 1.0 / np.sqrt(fan_in)
        w = jax.random.uniform(kw, (fan_in, fan_out), jnp.float32, -bound, bound)
        b = jax.random.uniform(kb, (fan_out,), jnp.float32, -bound, bound)
        params.append((w, b))
    return params


# ----------------------------------------------------------------------------
# Pure-JAX f32 reference for a correctness sanity check
# ----------------------------------------------------------------------------
def ref_forward(x, params, output_shape):
    h = x
    for i, (w, b) in enumerate(params):
        h = h @ w + b
        if i < len(params) - 1:
            h = jnp.where(h > 0, h, jnp.exp(jnp.minimum(h, 0.0)) - 1.0)
    return h.reshape((x.shape[0],) + tuple(output_shape))


if __name__ == "__main__":
    # Small shapes consistent with DenseModel's MLP forward.
    batch = 8
    input_size = 32
    node_size = 64
    n_layers = 3              # info['n_layers']
    output_shape = (4,)       # self._output_shape
    # info['activation'] = nn.ELU
    # TODO(synk): td.Independent(td.Normal/Bernoulli) wrapping has no Pallas
    # equivalent; the kernel returns the distribution parameters (out_dist),
    # i.e. the `dist is None` branch.

    key = jax.random.PRNGKey(0)
    key, kx = jax.random.split(key)
    x = jax.random.normal(kx, (batch, input_size), dtype=jnp.float32)

    params = init_dense_model_params(
        key, input_size, node_size, n_layers, output_shape)
    # Pad / bf16-cast the weights ONCE, outside the per-call hot path.
    prepared = prepare_dense_model_params(params)

    try:
        out = jax.block_until_ready(
            dense_model_forward(x, prepared, output_shape,
                                single_buffer_weights=True))
    except Exception:
        # Fallback for Pallas builds where BlockSpec pipeline_mode /
        # Buffered(1) is unsupported: default (double-buffered) weight specs.
        out = jax.block_until_ready(
            dense_model_forward(x, prepared, output_shape,
                                single_buffer_weights=False))

    ref = ref_forward(x, params, output_shape)
    # bf16 MXU operands with f32 accumulation -> ~1e-2-level deviation.
    np.testing.assert_allclose(np.asarray(out), np.asarray(ref),
                               rtol=3e-2, atol=3e-2)

    print("KERNEL_OK")
</pallas_src>

<mosaic_0001>
module attributes {stable_mosaic.version = 11 : i64} {
  func.func @kernel(%arg0: i32, %arg1: memref<8x128xbf16, #tpu.memory_space<vmem>>, %arg2: memref<128x128xbf16, #tpu.memory_space<vmem>>, %arg3: memref<1x128xf32, #tpu.memory_space<vmem>>, %arg4: memref<128x128xbf16, #tpu.memory_space<vmem>>, %arg5: memref<1x128xf32, #tpu.memory_space<vmem>>, %arg6: memref<128x128xbf16, #tpu.memory_space<vmem>>, %arg7: memref<1x128xf32, #tpu.memory_space<vmem>>, %arg8: memref<128x128xbf16, #tpu.memory_space<vmem>>, %arg9: memref<1x128xf32, #tpu.memory_space<vmem>>, %arg10: memref<8x128xf32, #tpu.memory_space<vmem>>) attributes {dimension_semantics = [#tpu.dimension_semantics<parallel>], iteration_bounds = array<i64: 1>, scalar_prefetch = 0 : i64, scratch_operands = 0 : i64, tpu.core_type = #tpu.core_type<tc>, window_params = [{transform_indices = @transform_0, window_bounds = array<i64: 8, 128>}, {pipeline_mode = #tpu.pipeline_mode<synchronous>, transform_indices = @transform_1, window_bounds = array<i64: 128, 128>}, {pipeline_mode = #tpu.pipeline_mode<synchronous>, transform_indices = @transform_2, window_bounds = array<i64: 1, 128>}, {pipeline_mode = #tpu.pipeline_mode<synchronous>, transform_indices = @transform_3, window_bounds = array<i64: 128, 128>}, {pipeline_mode = #tpu.pipeline_mode<synchronous>, transform_indices = @transform_4, window_bounds = array<i64: 1, 128>}, {pipeline_mode = #tpu.pipeline_mode<synchronous>, transform_indices = @transform_5, window_bounds = array<i64: 128, 128>}, {pipeline_mode = #tpu.pipeline_mode<synchronous>, transform_indices = @transform_6, window_bounds = array<i64: 1, 128>}, {pipeline_mode = #tpu.pipeline_mode<synchronous>, transform_indices = @transform_7, window_bounds = array<i64: 128, 128>}, {pipeline_mode = #tpu.pipeline_mode<synchronous>, transform_indices = @transform_8, window_bounds = array<i64: 1, 128>}, {transform_indices = @transform_9, window_bounds = array<i64: 8, 128>}]} {
    %c0 = arith.constant 0 : index
    %c0_0 = arith.constant 0 : index
    %0 = vector.load %arg1[%c0, %c0_0] : memref<8x128xbf16, #tpu.memory_space<vmem>>, vector<8x128xbf16>
    %c0_1 = arith.constant 0 : index
    %c0_2 = arith.constant 0 : index
    %1 = vector.load %arg2[%c0_1, %c0_2] : memref<128x128xbf16, #tpu.memory_space<vmem>>, vector<128x128xbf16>
    %c0_3 = arith.constant 0 : index
    %c0_4 = arith.constant 0 : index
    %2 = vector.load %arg3[%c0_3, %c0_4] : memref<1x128xf32, #tpu.memory_space<vmem>>, vector<1x128xf32>
    %cst = arith.constant dense<0.000000e+00> : vector<8x128xf32>
    %3 = tpu.matmul %0, %1, %cst {dimension_numbers = #tpu.dot_dimension_numbers<[1], [0], [0], [1], [0, 0, 1, 1], [], []>} : vector<8x128xbf16>, vector<128x128xbf16>, vector<8x128xf32> -> vector<8x128xf32>
    %4 = vector.broadcast %2 : vector<1x128xf32> to vector<8x128xf32>
    %5 = arith.addf %3, %4 : vector<8x128xf32>
    %cst_5 = arith.constant 0.000000e+00 : f32
    %6 = vector.broadcast %cst_5 : f32 to vector<8x128xf32>
    %7 = arith.minimumf %5, %6 : vector<8x128xf32>
    %8 = math.exp %7 : vector<8x128xf32>
    %cst_6 = arith.constant 1.000000e+00 : f32
    %9 = vector.broadcast %cst_6 : f32 to vector<8x128xf32>
    %10 = arith.subf %8, %9 : vector<8x128xf32>
    %cst_7 = arith.constant 0.000000e+00 : f32
    %11 = vector.broadcast %cst_7 : f32 to vector<8x128xf32>
    %12 = arith.cmpf ogt, %5, %11 : vector<8x128xf32>
    %13 = arith.select %12, %5, %10 : vector<8x128xi1>, vector<8x128xf32>
    %14 = arith.truncf %13 : vector<8x128xf32> to vector<8x128xbf16>
    %c0_8 = arith.constant 0 : index
    %c0_9 = arith.constant 0 : index
    %15 = vector.load %arg4[%c0_8, %c0_9] : memref<128x128xbf16, #tpu.memory_space<vmem>>, vector<128x128xbf16>
    %c0_10 = arith.constant 0 : index
    %c0_11 = arith.constant 0 : index
    %16 = vector.load %arg5[%c0_10, %c0_11] : memref<1x128xf32, #tpu.memory_space<vmem>>, vector<1x128xf32>
    %cst_12 = arith.constant dense<0.000000e+00> : vector<8x128xf32>
    %17 = tpu.matmul %14, %15, %cst_12 {dimension_numbers = #tpu.dot_dimension_numbers<[1], [0], [0], [1], [0, 0, 1, 1], [], []>} : vector<8x128xbf16>, vector<128x128xbf16>, vector<8x128xf32> -> vector<8x128xf32>
    %18 = vector.broadcast %16 : vector<1x128xf32> to vector<8x128xf32>
    %19 = arith.addf %17, %18 : vector<8x128xf32>
    %cst_13 = arith.constant 0.000000e+00 : f32
    %20 = vector.broadcast %cst_13 : f32 to vector<8x128xf32>
    %21 = arith.minimumf %19, %20 : vector<8x128xf32>
    %22 = math.exp %21 : vector<8x128xf32>
    %cst_14 = arith.constant 1.000000e+00 : f32
    %23 = vector.broadcast %cst_14 : f32 to vector<8x128xf32>
    %24 = arith.subf %22, %23 : vector<8x128xf32>
    %cst_15 = arith.constant 0.000000e+00 : f32
    %25 = vector.broadcast %cst_15 : f32 to vector<8x128xf32>
    %26 = arith.cmpf ogt, %19, %25 : vector<8x128xf32>
    %27 = arith.select %26, %19, %24 : vector<8x128xi1>, vector<8x128xf32>
    %28 = arith.truncf %27 : vector<8x128xf32> to vector<8x128xbf16>
    %c0_16 = arith.constant 0 : index
    %c0_17 = arith.constant 0 : index
    %29 = vector.load %arg6[%c0_16, %c0_17] : memref<128x128xbf16, #tpu.memory_space<vmem>>, vector<128x128xbf16>
    %c0_18 = arith.constant 0 : index
    %c0_19 = arith.constant 0 : index
    %30 = vector.load %arg7[%c0_18, %c0_19] : memref<1x128xf32, #tpu.memory_space<vmem>>, vector<1x128xf32>
    %cst_20 = arith.constant dense<0.000000e+00> : vector<8x128xf32>
    %31 = tpu.matmul %28, %29, %cst_20 {dimension_numbers = #tpu.dot_dimension_numbers<[1], [0], [0], [1], [0, 0, 1, 1], [], []>} : vector<8x128xbf16>, vector<128x128xbf16>, vector<8x128xf32> -> vector<8x128xf32>
    %32 = vector.broadcast %30 : vector<1x128xf32> to vector<8x128xf32>
    %33 = arith.addf %31, %32 : vector<8x128xf32>
    %cst_21 = arith.constant 0.000000e+00 : f32
    %34 = vector.broadcast %cst_21 : f32 to vector<8x128xf32>
    %35 = arith.minimumf %33, %34 : vector<8x128xf32>
    %36 = math.exp %35 : vector<8x128xf32>
    %cst_22 = arith.constant 1.000000e+00 : f32
    %37 = vector.broadcast %cst_22 : f32 to vector<8x128xf32>
    %38 = arith.subf %36, %37 : vector<8x128xf32>
    %cst_23 = arith.constant 0.000000e+00 : f32
    %39 = vector.broadcast %cst_23 : f32 to vector<8x128xf32>
    %40 = arith.cmpf ogt, %33, %39 : vector<8x128xf32>
    %41 = arith.select %40, %33, %38 : vector<8x128xi1>, vector<8x128xf32>
    %42 = arith.truncf %41 : vector<8x128xf32> to vector<8x128xbf16>
    %c0_24 = arith.constant 0 : index
    %c0_25 = arith.constant 0 : index
    %43 = vector.load %arg8[%c0_24, %c0_25] : memref<128x128xbf16, #tpu.memory_space<vmem>>, vector<128x128xbf16>
    %c0_26 = arith.constant 0 : index
    %c0_27 = arith.constant 0 : index
    %44 = vector.load %arg9[%c0_26, %c0_27] : memref<1x128xf32, #tpu.memory_space<vmem>>, vector<1x128xf32>
    %cst_28 = arith.constant dense<0.000000e+00> : vector<8x128xf32>
    %45 = tpu.matmul %42, %43, %cst_28 {dimension_numbers = #tpu.dot_dimension_numbers<[1], [0], [0], [1], [0, 0, 1, 1], [], []>} : vector<8x128xbf16>, vector<128x128xbf16>, vector<8x128xf32> -> vector<8x128xf32>
    %46 = vector.broadcast %44 : vector<1x128xf32> to vector<8x128xf32>
    %47 = arith.addf %45, %46 : vector<8x128xf32>
    %c0_29 = arith.constant 0 : index
    %c0_30 = arith.constant 0 : index
    %48 = vector.load %arg10[%c0_29, %c0_30] : memref<8x128xf32, #tpu.memory_space<vmem>>, vector<8x128xf32>
    tpu.vector_store %arg10[%c0_29, %c0_30], %47 {strides = array<i32>} : memref<8x128xf32, #tpu.memory_space<vmem>>, vector<8x128xf32>,
    return
  }
  func.func @transform_0(%arg0: i32) -> (i32, i32) {
    %c0_i32 = arith.constant 0 : i32
    %c0_i32_0 = arith.constant 0 : i32
    return %arg0, %c0_i32 : i32, i32
  }
  func.func @transform_1(%arg0: i32) -> (i32, i32) {
    %c0_i32 = arith.constant 0 : i32
    %c0_i32_0 = arith.constant 0 : i32
    %c0_i32_1 = arith.constant 0 : i32
    return %c0_i32, %c0_i32_0 : i32, i32
  }
  func.func @transform_2(%arg0: i32) -> (i32, i32) {
    %c0_i32 = arith.constant 0 : i32
    %c0_i32_0 = arith.constant 0 : i32
    %c0_i32_1 = arith.constant 0 : i32
    return %c0_i32, %c0_i32_0 : i32, i32
  }
  func.func @transform_3(%arg0: i32) -> (i32, i32) {
    %c0_i32 = arith.constant 0 : i32
    %c0_i32_0 = arith.constant 0 : i32
    %c0_i32_1 = arith.constant 0 : i32
    return %c0_i32, %c0_i32_0 : i32, i32
  }
  func.func @transform_4(%arg0: i32) -> (i32, i32) {
    %c0_i32 = arith.constant 0 : i32
    %c0_i32_0 = arith.constant 0 : i32
    %c0_i32_1 = arith.constant 0 : i32
    return %c0_i32, %c0_i32_0 : i32, i32
  }
  func.func @transform_5(%arg0: i32) -> (i32, i32) {
    %c0_i32 = arith.constant 0 : i32
    %c0_i32_0 = arith.constant 0 : i32
    %c0_i32_1 = arith.constant 0 : i32
    return %c0_i32, %c0_i32_0 : i32, i32
  }
  func.func @transform_6(%arg0: i32) -> (i32, i32) {
    %c0_i32 = arith.constant 0 : i32
    %c0_i32_0 = arith.constant 0 : i32
    %c0_i32_1 = arith.constant 0 : i32
    return %c0_i32, %c0_i32_0 : i32, i32
  }
  func.func @transform_7(%arg0: i32) -> (i32, i32) {
    %c0_i32 = arith.constant 0 : i32
    %c0_i32_0 = arith.constant 0 : i32
    %c0_i32_1 = arith.constant 0 : i32
    return %c0_i32, %c0_i32_0 : i32, i32
  }
  func.func @transform_8(%arg0: i32) -> (i32, i32) {
    %c0_i32 = arith.constant 0 : i32
    %c0_i32_0 = arith.constant 0 : i32
    %c0_i32_1 = arith.constant 0 : i32
    return %c0_i32, %c0_i32_0 : i32, i32
  }
  func.func @transform_9(%arg0: i32) -> (i32, i32) {
    %c0_i32 = arith.constant 0 : i32
    %c0_i32_0 = arith.constant 0 : i32
    return %arg0, %c0_i32 : i32, i32
  }
}

module attributes {stable_mosaic.version = 11 : i64} {
  func.func @kernel(%arg0: i32, %arg1: memref<8x128xbf16, #tpu.memory_space<vmem>>, %arg2: memref<128x128xbf16, #tpu.memory_space<vmem>>, %arg3: memref<1x128xf32, #tpu.memory_space<vmem>>, %arg4: memref<128x128xbf16, #tpu.memory_space<vmem>>, %arg5: memref<1x128xf32, #tpu.memory_space<vmem>>, %arg6: memref<128x128xbf16, #tpu.memory_space<vmem>>, %arg7: memref<1x128xf32, #tpu.memory_space<vmem>>, %arg8: memref<128x128xbf16, #tpu.memory_space<vmem>>, %arg9: memref<1x128xf32, #tpu.memory_space<vmem>>, %arg10: memref<8x128xf32, #tpu.memory_space<vmem>>) attributes {dimension_semantics = [#tpu.dimension_semantics<parallel>], iteration_bounds = array<i64: 1>, scalar_prefetch = 0 : i64, scratch_operands = 0 : i64, tpu.core_type = #tpu.core_type<tc>, window_params = [{transform_indices = @transform_0, window_bounds = array<i64: 8, 128>}, {pipeline_mode = #tpu.pipeline_mode<synchronous>, transform_indices = @transform_1, window_bounds = array<i64: 128, 128>}, {pipeline_mode = #tpu.pipeline_mode<synchronous>, transform_indices = @transform_2, window_bounds = array<i64: 1, 128>}, {pipeline_mode = #tpu.pipeline_mode<synchronous>, transform_indices = @transform_3, window_bounds = array<i64: 128, 128>}, {pipeline_mode = #tpu.pipeline_mode<synchronous>, transform_indices = @transform_4, window_bounds = array<i64: 1, 128>}, {pipeline_mode = #tpu.pipeline_mode<synchronous>, transform_indices = @transform_5, window_bounds = array<i64: 128, 128>}, {pipeline_mode = #tpu.pipeline_mode<synchronous>, transform_indices = @transform_6, window_bounds = array<i64: 1, 128>}, {pipeline_mode = #tpu.pipeline_mode<synchronous>, transform_indices = @transform_7, window_bounds = array<i64: 128, 128>}, {pipeline_mode = #tpu.pipeline_mode<synchronous>, transform_indices = @transform_8, window_bounds = array<i64: 1, 128>}, {transform_indices = @transform_9, window_bounds = array<i64: 8, 128>}]} {
    %c0 = arith.constant 0 : index
    %c0_0 = arith.constant 0 : index
    %0 = vector.load %arg1[%c0, %c0_0] : memref<8x128xbf16, #tpu.memory_space<vmem>>, vector<8x128xbf16>
    %c0_1 = arith.constant 0 : index
    %c0_2 = arith.constant 0 : index
    %1 = vector.load %arg2[%c0_1, %c0_2] : memref<128x128xbf16, #tpu.memory_space<vmem>>, vector<128x128xbf16>
    %c0_3 = arith.constant 0 : index
    %c0_4 = arith.constant 0 : index
    %2 = vector.load %arg3[%c0_3, %c0_4] : memref<1x128xf32, #tpu.memory_space<vmem>>, vector<1x128xf32>
    %cst = arith.constant dense<0.000000e+00> : vector<8x128xf32>
    %3 = tpu.matmul %0, %1, %cst {dimension_numbers = #tpu.dot_dimension_numbers<[1], [0], [0], [1], [0, 0, 1, 1], [], []>} : vector<8x128xbf16>, vector<128x128xbf16>, vector<8x128xf32> -> vector<8x128xf32>
    %4 = vector.broadcast %2 : vector<1x128xf32> to vector<8x128xf32>
    %5 = arith.addf %3, %4 : vector<8x128xf32>
    %cst_5 = arith.constant 0.000000e+00 : f32
    %6 = vector.broadcast %cst_5 : f32 to vector<8x128xf32>
    %7 = arith.minimumf %5, %6 : vector<8x128xf32>
    %8 = math.exp %7 : vector<8x128xf32>
    %cst_6 = arith.constant 1.000000e+00 : f32
    %9 = vector.broadcast %cst_6 : f32 to vector<8x128xf32>
    %10 = arith.subf %8, %9 : vector<8x128xf32>
    %cst_7 = arith.constant 0.000000e+00 : f32
    %11 = vector.broadcast %cst_7 : f32 to vector<8x128xf32>
    %12 = arith.cmpf ogt, %5, %11 : vector<8x128xf32>
    %13 = arith.select %12, %5, %10 : vector<8x128xi1>, vector<8x128xf32>
    %14 = arith.truncf %13 : vector<8x128xf32> to vector<8x128xbf16>
    %c0_8 = arith.constant 0 : index
    %c0_9 = arith.constant 0 : index
    %15 = vector.load %arg4[%c0_8, %c0_9] : memref<128x128xbf16, #tpu.memory_space<vmem>>, vector<128x128xbf16>
    %c0_10 = arith.constant 0 : index
    %c0_11 = arith.constant 0 : index
    %16 = vector.load %arg5[%c0_10, %c0_11] : memref<1x128xf32, #tpu.memory_space<vmem>>, vector<1x128xf32>
    %cst_12 = arith.constant dense<0.000000e+00> : vector<8x128xf32>
    %17 = tpu.matmul %14, %15, %cst_12 {dimension_numbers = #tpu.dot_dimension_numbers<[1], [0], [0], [1], [0, 0, 1, 1], [], []>} : vector<8x128xbf16>, vector<128x128xbf16>, vector<8x128xf32> -> vector<8x128xf32>
    %18 = vector.broadcast %16 : vector<1x128xf32> to vector<8x128xf32>
    %19 = arith.addf %17, %18 : vector<8x128xf32>
    %cst_13 = arith.constant 0.000000e+00 : f32
    %20 = vector.broadcast %cst_13 : f32 to vector<8x128xf32>
    %21 = arith.minimumf %19, %20 : vector<8x128xf32>
    %22 = math.exp %21 : vector<8x128xf32>
    %cst_14 = arith.constant 1.000000e+00 : f32
    %23 = vector.broadcast %cst_14 : f32 to vector<8x128xf32>
    %24 = arith.subf %22, %23 : vector<8x128xf32>
    %cst_15 = arith.constant 0.000000e+00 : f32
    %25 = vector.broadcast %cst_15 : f32 to vector<8x128xf32>
    %26 = arith.cmpf ogt, %19, %25 : vector<8x128xf32>
    %27 = arith.select %26, %19, %24 : vector<8x128xi1>, vector<8x128xf32>
    %28 = arith.truncf %27 : vector<8x128xf32> to vector<8x128xbf16>
    %c0_16 = arith.constant 0 : index
    %c0_17 = arith.constant 0 : index
    %29 = vector.load %arg6[%c0_16, %c0_17] : memref<128x128xbf16, #tpu.memory_space<vmem>>, vector<128x128xbf16>
    %c0_18 = arith.constant 0 : index
    %c0_19 = arith.constant 0 : index
    %30 = vector.load %arg7[%c0_18, %c0_19] : memref<1x128xf32, #tpu.memory_space<vmem>>, vector<1x128xf32>
    %cst_20 = arith.constant dense<0.000000e+00> : vector<8x128xf32>
    %31 = tpu.matmul %28, %29, %cst_20 {dimension_numbers = #tpu.dot_dimension_numbers<[1], [0], [0], [1], [0, 0, 1, 1], [], []>} : vector<8x128xbf16>, vector<128x128xbf16>, vector<8x128xf32> -> vector<8x128xf32>
    %32 = vector.broadcast %30 : vector<1x128xf32> to vector<8x128xf32>
    %33 = arith.addf %31, %32 : vector<8x128xf32>
    %cst_21 = arith.constant 0.000000e+00 : f32
    %34 = vector.broadcast %cst_21 : f32 to vector<8x128xf32>
    %35 = arith.minimumf %33, %34 : vector<8x128xf32>
    %36 = math.exp %35 : vector<8x128xf32>
    %cst_22 = arith.constant 1.000000e+00 : f32
    %37 = vector.broadcast %cst_22 : f32 to vector<8x128xf32>
    %38 = arith.subf %36, %37 : vector<8x128xf32>
    %cst_23 = arith.constant 0.000000e+00 : f32
    %39 = vector.broadcast %cst_23 : f32 to vector<8x128xf32>
    %40 = arith.cmpf ogt, %33, %39 : vector<8x128xf32>
    %41 = arith.select %40, %33, %38 : vector<8x128xi1>, vector<8x128xf32>
    %42 = arith.truncf %41 : vector<8x128xf32> to vector<8x128xbf16>
    %c0_24 = arith.constant 0 : index
    %c0_25 = arith.constant 0 : index
    %43 = vector.load %arg8[%c0_24, %c0_25] : memref<128x128xbf16, #tpu.memory_space<vmem>>, vector<128x128xbf16>
    %c0_26 = arith.constant 0 : index
    %c0_27 = arith.constant 0 : index
    %44 = vector.load %arg9[%c0_26, %c0_27] : memref<1x128xf32, #tpu.memory_space<vmem>>, vector<1x128xf32>
    %cst_28 = arith.constant dense<0.000000e+00> : vector<8x128xf32>
    %45 = tpu.matmul %42, %43, %cst_28 {dimension_numbers = #tpu.dot_dimension_numbers<[1], [0], [0], [1], [0, 0, 1, 1], [], []>} : vector<8x128xbf16>, vector<128x128xbf16>, vector<8x128xf32> -> vector<8x128xf32>
    %46 = vector.broadcast %44 : vector<1x128xf32> to vector<8x128xf32>
    %47 = arith.addf %45, %46 : vector<8x128xf32>
    %c0_29 = arith.constant 0 : index
    %c0_30 = arith.constant 0 : index
    %48 = vector.load %arg10[%c0_29, %c0_30] : memref<8x128xf32, #tpu.memory_space<vmem>>, vector<8x128xf32>
    tpu.vector_store %arg10[%c0_29, %c0_30], %47 {strides = array<i32>} : memref<8x128xf32, #tpu.memory_space<vmem>>, vector<8x128xf32>,
    return
  }
  func.func @transform_0(%arg0: i32) -> (i32, i32) {
    %c0_i32 = arith.constant 0 : i32
    %c0_i32_0 = arith.constant 0 : i32
    return %arg0, %c0_i32 : i32, i32
  }
  func.func @transform_1(%arg0: i32) -> (i32, i32) {
    %c0_i32 = arith.constant 0 : i32
    %c0_i32_0 = arith.constant 0 : i32
    %c0_i32_1 = arith.constant 0 : i32
    return %c0_i32, %c0_i32_0 : i32, i32
  }
  func.func @transform_2(%arg0: i32) -> (i32, i32) {
    %c0_i32 = arith.constant 0 : i32
    %c0_i32_0 = arith.constant 0 : i32
    %c0_i32_1 = arith.constant 0 : i32
    return %c0_i32, %c0_i32_0 : i32, i32
  }
  func.func @transform_3(%arg0: i32) -> (i32, i32) {
    %c0_i32 = arith.constant 0 : i32
    %c0_i32_0 = arith.constant 0 : i32
    %c0_i32_1 = arith.constant 0 : i32
    return %c0_i32, %c0_i32_0 : i32, i32
  }
  func.func @transform_4(%arg0: i32) -> (i32, i32) {
    %c0_i32 = arith.constant 0 : i32
    %c0_i32_0 = arith.constant 0 : i32
    %c0_i32_1 = arith.constant 0 : i32
    return %c0_i32, %c0_i32_0 : i32, i32
  }
  func.func @transform_5(%arg0: i32) -> (i32, i32) {
    %c0_i32 = arith.constant 0 : i32
    %c0_i32_0 = arith.constant 0 : i32
    %c0_i32_1 = arith.constant 0 : i32
    return %c0_i32, %c0_i32_0 : i32, i32
  }
  func.func @transform_6(%arg0: i32) -> (i32, i32) {
    %c0_i32 = arith.constant 0 : i32
    %c0_i32_0 = arith.constant 0 : i32
    %c0_i32_1 = arith.constant 0 : i32
    return %c0_i32, %c0_i32_0 : i32, i32
  }
  func.func @transform_7(%arg0: i32) -> (i32, i32) {
    %c0_i32 = arith.constant 0 : i32
    %c0_i32_0 = arith.constant 0 : i32
    %c0_i32_1 = arith.constant 0 : i32
    return %c0_i32, %c0_i32_0 : i32, i32
  }
  func.func @transform_8(%arg0: i32) -> (i32, i32) {
    %c0_i32 = arith.constant 0 : i32
    %c0_i32_0 = arith.constant 0 : i32
    %c0_i32_1 = arith.constant 0 : i32
    return %c0_i32, %c0_i32_0 : i32, i32
  }
  func.func @transform_9(%arg0: i32) -> (i32, i32) {
    %c0_i32 = arith.constant 0 : i32
    %c0_i32_0 = arith.constant 0 : i32
    return %arg0, %c0_i32 : i32, i32
  }
}

</mosaic_0001>

<bundles_post_ra>
// kernel: dense_model_forward.1
= control target key start
LH: loop header
LB: loop body
LE: loop exit
PB: predicated region body
PF: predicated region fallthrough
CT: control target
= control target key end

     0   :  { %14 = vsyncpa [#allocation3], 0  ;;  %s989_s0 = inlined_call_operand.vmem [shape: bf16[8,128], index: 0, kind: input, shape index: {}]   ;;  %s990_s1 = inlined_call_operand.hbm [shape: bf16[128,128], index: 1, kind: input, shape index: {}]   ;;  %s991_s2 = inlined_call_operand.vmem [shape: f32[1,128], index: 2, kind: input, shape index: {}]   ;;  %s992_s3 = inlined_call_operand.hbm [shape: bf16[128,128], index: 3, kind: input, shape index: {}]   ;;  %s993_s4 = inlined_call_operand.vmem [shape: f32[1,128], index: 4, kind: input, shape index: {}]   ;;  %s994_s5 = inlined_call_operand.hbm [shape: bf16[128,128], index: 5, kind: input, shape index: {}]   ;;  %s995_s6 = inlined_call_operand.vmem [shape: f32[1,128], index: 6, kind: input, shape index: {}]   ;;  %s996_s7 = inlined_call_operand.hbm [shape: bf16[128,128], index: 7, kind: input, shape index: {}]   ;;  %s997_s8 = inlined_call_operand.vmem [shape: f32[1,128], index: 8, kind: input, shape index: {}]   ;;  %s998_s9 = inlined_call_operand.vmem [shape: f32[8,128], index: 9, kind: output, shape index: {}]  }
   0x1   :  { %15 = vsyncpa [#allocation5], 0 }
   0x2   :  { %16 = vsyncpa [#allocation8], 0  ;;  %s849_s30 = smov [#allocation4]   ;;  %s850_s11 = smov [#allocation2]  }
   0x3   :  { %s38_s10 = sshll.u32 %s849_s30, 4  ;;  %s24_s12 = sshll.u32 %s850_s11, 4  ;;  %s39_s10 = int_to_ptr.vmem [resolvable:$true] %s38_s10  ;;  %s25_s12 = int_to_ptr.vmem [resolvable:$true] %s24_s12 }
   0x4   :  { %s771_s13 = scalar_lea.vmem %s39_s10, 1024  ;;  %p776_p1 = scmp.lt.s32.totalorder %s39_s10, %s39_s10 }
   0x5   :  { %p772_p0 = scmp.ne.s32.totalorder %s39_s10, %s771_s13  ;;  %p777_p2 = scmp.lt.s32.totalorder %s771_s13, %s771_s13 }
   0x7   :  { %p778_p3 = por %p777_p2, %p776_p1 }
   0x9   :  { %p779_p4 = pnand %p778_p3, %p772_p0 }
   0xb   :  { %782 = shalt.err (!%p779_p4)
}
   0xc   :  { %s851_s14 = smov 64   ;;  %s852_s15 = smov 4  }
   0xd   :  { %44 = dma.hbm_to_vmem [thread:$0]  %s992_s3, 1024, %s39_s10, [#allocation5], %s851_s14, %s851_s14, %s852_s15  }
   0xe   :  { %s791_s18 = scalar_lea.vmem %s25_s12, 1024  ;;  %p796_p6 = scmp.lt.s32.totalorder %s25_s12, %s25_s12 }
   0xf   :  { %p792_p5 = scmp.ne.s32.totalorder %s25_s12, %s791_s18  ;;  %p797_p7 = scmp.lt.s32.totalorder %s791_s18, %s791_s18 }
  0x11   :  { %p798_p8 = por %p797_p7, %p796_p6 }
  0x13   :  { %p799_p9 = pnand %p798_p8, %p792_p5 }
  0x15   :  { %802 = shalt.err (!%p799_p9)
}
  0x16   :  { %30 = dma.hbm_to_vmem [thread:$0]  %s990_s1, 1024, %s25_s12, [#allocation3], %s851_s14, %s851_s14, %s852_s15  }
  0x17   :  { %s853_s21 = smov [#allocation6]   ;;  %s854_s23 = smov [#allocation7]  }
  0x18   :  { %s52_s22 = sshll.u32 %s853_s21, 4  ;;  %s66_s24 = sshll.u32 %s854_s23, 4  ;;  %s53_s22 = int_to_ptr.vmem [resolvable:$true] %s52_s22  ;;  %s67_s24 = int_to_ptr.vmem [resolvable:$true] %s66_s24 }
  0x19   :  { %s811_s3 = scalar_lea.vmem %s53_s22, 1024  ;;  %p816_p11 = scmp.lt.s32.totalorder %s53_s22, %s53_s22 }
  0x1a   :  { %p812_p10 = scmp.ne.s32.totalorder %s53_s22, %s811_s3  ;;  %p817_p12 = scmp.lt.s32.totalorder %s811_s3, %s811_s3 }
  0x1c   :  { %p818_p13 = por %p817_p12, %p816_p11 }
  0x1e   :  { %p819_p0 = pnand %p818_p13, %p812_p10 }
  0x20   :  { %822 = shalt.err (!%p819_p0)
}
  0x21   :  { %58 = dma.hbm_to_vmem [thread:$0]  %s994_s5, 1024, %s53_s22, [#allocation5], %s851_s14, %s851_s14, %s852_s15  }
  0x22   :  { %s831_s1 = scalar_lea.vmem %s67_s24, 1024  ;;  %p836_p2 = scmp.lt.s32.totalorder %s67_s24, %s67_s24 }
  0x23   :  { %p832_p1 = scmp.ne.s32.totalorder %s67_s24, %s831_s1  ;;  %p837_p3 = scmp.lt.s32.totalorder %s831_s1, %s831_s1 }
  0x25   :  { %p838_p4 = por %p837_p3, %p836_p2 }
  0x27   :  { %p839_p5 = pnand %p838_p4, %p832_p1 }
  0x29   :  { %842 = shalt.err (!%p839_p5)
}
  0x2a   :  { %72 = dma.hbm_to_vmem [thread:$0]  %s996_s7, 1024, %s67_s24, [#allocation8], %s851_s14, %s851_s14, %s852_s15  }
  0x2b   :  { %843 = dma.done.wait [#allocation3], 1024  }
  0x2c   :  { %844 = vsyncadd [#allocation3], 4294966272 }
  0x2d   :  { %845 = dma.done.wait [#allocation5], 2048  }
  0x2e   :  { %846 = vsyncadd [#allocation5], 4294965248 }
  0x2f   :  { %847 = dma.done.wait [#allocation8], 1024  }
  0x30   :  { %848 = vsyncadd [#allocation8], 4294966272  ;;  %v855_v0 = vmov 0.0   ;;  %vm856_vm0 = vmmov 0   ;;  %v725_v1 = vld [vmem:[#allocation2 + $0x38] sm:$0xff]   ;;  %v726_v2 = vld [vmem:[#allocation2 + $0x30] sm:$0xff]  }
  0x31   :  { %637 = vmatprep.subr.bf16.mxu0 %v855_v0  ;;  %653 = vmatprep.mubr.msk.bf16.mxu0 %vm856_vm0, %v855_v0  ;;  %v727_v3 = vld [vmem:[#allocation2 + $0x28] sm:$0xff]   ;;  %v733_v4 = vld [vmem:[#allocation4 + $0x38] sm:$0xff]   ;;  %v728_v5 = vld [vmem:[#allocation2 + $0x20] sm:$0xff]  }
  0x32   :  { %657 = vmatprep.subr.bf16.mxu1 %v855_v0  ;;  %673 = vmatprep.mubr.msk.bf16.mxu1 %vm856_vm0, %v855_v0  ;;  %v734_v6 = vld [vmem:[#allocation4 + $0x30] sm:$0xff]   ;;  %v729_v7 = vld [vmem:[#allocation2 + $0x18] sm:$0xff]   ;;  %v731_v9 = vld [vmem:[#allocation2 + $0x8] sm:$0xff]  }
  0x33   :  { %638 = vmatpush3.bf16.msra.mxu0 %v725_v1  ;;  %658 = vmatpush3.bf16.msra.mxu1 %v733_v4  ;;  %v730_v8 = vld [vmem:[#allocation2 + $0x10] sm:$0xff]   ;;  %v732_v10 = vld [vmem:[#allocation2] sm:$0xff]   ;;  %v735_v12 = vld [vmem:[#allocation4 + $0x28] sm:$0xff]  }
  0x34   :  { %639 = vmatprep.subr.bf16.mxu0 %v855_v0  ;;  %659 = vmatprep.subr.bf16.mxu1 %v855_v0  ;;  %v88_v11 = vld [vmem:[%s989_s0] sm:$0xf]  ;;  %v737_v14 = vld [vmem:[#allocation4 + $0x18] sm:$0xff]   ;;  %v738_v15 = vld [vmem:[#allocation4 + $0x10] sm:$0xff]  }
  0x35   :  { %v736_v13 = vld [vmem:[#allocation4 + $0x20] sm:$0xff]   ;;  %v739_v16 = vld [vmem:[#allocation4 + $0x8] sm:$0xff]   ;;  %v741_v18 = vld [vmem:[#allocation6 + $0x38] sm:$0xff]  }
  0x36   :  { %v740_v17 = vld [vmem:[#allocation4] sm:$0xff]   ;;  %v742_v19 = vld [vmem:[#allocation6 + $0x30] sm:$0xff]   ;;  %v743_v32 = vld [vmem:[#allocation6 + $0x28] sm:$0xff]  }
  0x37   :  { %640 = vmatpush3.bf16.msra.mxu0 %v726_v2  ;;  %660 = vmatpush3.bf16.msra.mxu1 %v734_v6  ;;  %v562_v20 = vld [vmem:[%s991_s2] ss:$0 sm:$0xff]  ;;  %v745_v34 = vld [vmem:[#allocation6 + $0x18] sm:$0xff]   ;;  %v746_v35 = vld [vmem:[#allocation6 + $0x10] sm:$0xff]  }
  0x38   :  { %641 = vmatprep.subr.bf16.mxu0 %v855_v0  ;;  %661 = vmatprep.subr.bf16.mxu1 %v855_v0  ;;  %v744_v33 = vld [vmem:[#allocation6 + $0x20] sm:$0xff]   ;;  %v747_v36 = vld [vmem:[#allocation6 + $0x8] sm:$0xff]   ;;  %v749_v38 = vld [vmem:[#allocation7 + $0x38] sm:$0xff]  }
  0x39   :  { %v748_v37 = vld [vmem:[#allocation6] sm:$0xff]   ;;  %v750_v39 = vld [vmem:[#allocation7 + $0x30] sm:$0xff]   ;;  %v751_v52 = vld [vmem:[#allocation7 + $0x28] sm:$0xff]  }
  0x3a   :  { %v572_v40 = vld [vmem:[%s993_s4] ss:$0 sm:$0xff]  ;;  %v753_v54 = vld [vmem:[#allocation7 + $0x18] sm:$0xff]   ;;  %v754_v55 = vld [vmem:[#allocation7 + $0x10] sm:$0xff]  }
  0x3b   :  { %642 = vmatpush3.bf16.msra.mxu0 %v727_v3  ;;  %662 = vmatpush3.bf16.msra.mxu1 %v735_v12  ;;  %v752_v53 = vld [vmem:[#allocation7 + $0x20] sm:$0xff]   ;;  %v755_v56 = vld [vmem:[#allocation7 + $0x8] sm:$0xff]  }
  0x3c   :  { %643 = vmatprep.subr.bf16.mxu0 %v855_v0  ;;  %663 = vmatprep.subr.bf16.mxu1 %v855_v0  ;;  %v756_v57 = vld [vmem:[#allocation7] sm:$0xff]  }
  0x3d   :  { %v582_v58 = vld [vmem:[%s995_s6] ss:$0 sm:$0xff] }
  0x3f   :  { %644 = vmatpush3.bf16.msra.mxu0 %v728_v5  ;;  %664 = vmatpush3.bf16.msra.mxu1 %v736_v13 }
  0x40   :  { %645 = vmatprep.subr.bf16.mxu0 %v855_v0  ;;  %665 = vmatprep.subr.bf16.mxu1 %v855_v0 }
  0x43   :  { %646 = vmatpush3.bf16.msra.mxu0 %v729_v7  ;;  %666 = vmatpush3.bf16.msra.mxu1 %v737_v14 }
  0x44   :  { %647 = vmatprep.subr.bf16.mxu0 %v855_v0  ;;  %667 = vmatprep.subr.bf16.mxu1 %v855_v0 }
  0x47   :  { %648 = vmatpush3.bf16.msra.mxu0 %v730_v8  ;;  %668 = vmatpush3.bf16.msra.mxu1 %v738_v15 }
  0x48   :  { %649 = vmatprep.subr.bf16.mxu0 %v855_v0  ;;  %669 = vmatprep.subr.bf16.mxu1 %v855_v0 }
  0x4b   :  { %650 = vmatpush3.bf16.msra.mxu0 %v731_v9  ;;  %670 = vmatpush3.bf16.msra.mxu1 %v739_v16 }
  0x4c   :  { %651 = vmatprep.subr.bf16.mxu0 %v855_v0  ;;  %671 = vmatprep.subr.bf16.mxu1 %v855_v0 }
  0x4f   :  { %652 = vmatpush3.bf16.msra.mxu0 %v732_v10  ;;  %672 = vmatpush3.bf16.msra.mxu1 %v740_v17 }
  0x50   :  { %677 = vmatprep.subr.bf16.mxu0 %v855_v0  ;;  %697 = vmatprep.subr.bf16.mxu1 %v855_v0 }
  0x52   :  { %654 = vmatmul.mubr.bf16.vlgmr.msra.gmra.mxu0 %v88_v11 }
  0x53   :  { %693 = vmatprep.mubr.msk.bf16.mxu0 %vm856_vm0, %v855_v0  ;;  %678 = vmatpush3.bf16.msra.mxu0 %v741_v18 }
  0x54   :  { %679 = vmatprep.subr.bf16.mxu0 %v855_v0 }
  0x57   :  { %680 = vmatpush3.bf16.msra.mxu0 %v742_v19 }
  0x58   :  { %681 = vmatprep.subr.bf16.mxu0 %v855_v0 }
  0x5b   :  { %682 = vmatpush3.bf16.msra.mxu0 %v743_v32 }
  0x5c   :  { %683 = vmatprep.subr.bf16.mxu0 %v855_v0 }
  0x5f   :  { %684 = vmatpush3.bf16.msra.mxu0 %v744_v33 }
  0x60   :  { %685 = vmatprep.subr.bf16.mxu0 %v855_v0 }
  0x63   :  { %686 = vmatpush3.bf16.msra.mxu0 %v745_v34 }
  0x64   :  { %687 = vmatprep.subr.bf16.mxu0 %v855_v0 }
  0x67   :  { %688 = vmatpush3.bf16.msra.mxu0 %v746_v35 }
  0x68   :  { %689 = vmatprep.subr.bf16.mxu0 %v855_v0 }
  0x6b   :  { %690 = vmatpush3.bf16.msra.mxu0 %v747_v36 }
  0x6c   :  { %691 = vmatprep.subr.bf16.mxu0 %v855_v0 }
  0x6f   :  { %692 = vmatpush3.bf16.msra.mxu0 %v748_v37 }
 0x112   :  { %v194_v21 = vpop.f32.mrf.mxu0 }
 0x113   :  { %v195_v22 = vadd.f32 %v562_v20, %v194_v21 }
 0x114   :  { %v655_v23 = vpop.f32.mrf.mxu0 }
 0x115   :  { %v200_v24 = vmin.f32 %v195_v22, 0.0  ;;  %vm204_vm1 = vcmp.gt.f32.partialorder %v195_v22, 0.0 }
 0x116   :  { %v197_v25 = vpop.f32.mrf.mxu0 }
 0x117   :  { %v201_v26 = vmul.f32 1.442695, %v200_v24 }
 0x118   :  { %v656_v27 = vpop.f32.mrf.mxu0 }
 0x119   :  { %757 = vpow2.f32 %v201_v26 }
 0x126   :  { %v758_v28 = vpop.eup %757 }
 0x127   :  { %v571_v29 = vadd.f32 -1.0, %v758_v28 }
 0x129   :  { %v205_v30 = vsel %vm204_vm1, %v195_v22, %v571_v29 }
 0x12a   :  { %v206_v31 = vpack.c.bf16 %v205_v30, %v205_v30 }
 0x12c   :  { %674 = vmatmul.mubr.bf16.vlgmr.msra.gmra.mxu1 %v206_v31 }
 0x12d   :  { %713 = vmatprep.mubr.msk.bf16.mxu1 %vm856_vm0, %v855_v0  ;;  %698 = vmatpush3.bf16.msra.mxu1 %v749_v38 }
 0x12e   :  { %699 = vmatprep.subr.bf16.mxu1 %v855_v0 }
 0x131   :  { %700 = vmatpush3.bf16.msra.mxu1 %v750_v39 }
 0x132   :  { %701 = vmatprep.subr.bf16.mxu1 %v855_v0 }
 0x135   :  { %702 = vmatpush3.bf16.msra.mxu1 %v751_v52 }
 0x136   :  { %703 = vmatprep.subr.bf16.mxu1 %v855_v0 }
 0x139   :  { %704 = vmatpush3.bf16.msra.mxu1 %v752_v53 }
 0x13a   :  { %705 = vmatprep.subr.bf16.mxu1 %v855_v0 }
 0x13d   :  { %706 = vmatpush3.bf16.msra.mxu1 %v753_v54 }
 0x13e   :  { %707 = vmatprep.subr.bf16.mxu1 %v855_v0 }
 0x141   :  { %708 = vmatpush3.bf16.msra.mxu1 %v754_v55 }
 0x142   :  { %709 = vmatprep.subr.bf16.mxu1 %v855_v0 }
 0x145   :  { %710 = vmatpush3.bf16.msra.mxu1 %v755_v56 }
 0x146   :  { %711 = vmatprep.subr.bf16.mxu1 %v855_v0  ;;  %v592_v0 = vld [vmem:[%s997_s8] ss:$0 sm:$0xff] }
 0x149   :  { %712 = vmatpush3.bf16.msra.mxu1 %v756_v57 }
 0x1ec   :  { %v312_v41 = vpop.f32.mrf.mxu1 }
 0x1ed   :  { %v313_v42 = vadd.f32 %v572_v40, %v312_v41 }
 0x1ee   :  { %v675_v43 = vpop.f32.mrf.mxu1 }
 0x1ef   :  { %v318_v44 = vmin.f32 %v313_v42, 0.0  ;;  %vm322_vm2 = vcmp.gt.f32.partialorder %v313_v42, 0.0 }
 0x1f0   :  { %v315_v45 = vpop.f32.mrf.mxu1 }
 0x1f1   :  { %v319_v46 = vmul.f32 1.442695, %v318_v44 }
 0x1f2   :  { %v676_v47 = vpop.f32.mrf.mxu1 }
 0x1f3   :  { %759 = vpow2.f32 %v319_v46 }
 0x200   :  { %v760_v48 = vpop.eup %759 }
 0x201   :  { %v581_v49 = vadd.f32 -1.0, %v760_v48 }
 0x203   :  { %v323_v50 = vsel %vm322_vm2, %v313_v42, %v581_v49 }
 0x204   :  { %v324_v51 = vpack.c.bf16 %v323_v50, %v323_v50 }
 0x206   :  { %694 = vmatmul.mubr.bf16.vlgmr.msra.gmra.mxu0 %v324_v51 }
 0x2c6   :  { %v430_v59 = vpop.f32.mrf.mxu0 }
 0x2c7   :  { %v431_v60 = vadd.f32 %v582_v58, %v430_v59 }
 0x2c8   :  { %v695_v61 = vpop.f32.mrf.mxu0 }
 0x2c9   :  { %v436_v62 = vmin.f32 %v431_v60, 0.0  ;;  %vm440_vm3 = vcmp.gt.f32.partialorder %v431_v60, 0.0 }
 0x2ca   :  { %v433_v63 = vpop.f32.mrf.mxu0 }
 0x2cb   :  { %v437_v1 = vmul.f32 1.442695, %v436_v62 }
 0x2cc   :  { %v696_v2 = vpop.f32.mrf.mxu0 }
 0x2cd   :  { %761 = vpow2.f32 %v437_v1 }
 0x2da   :  { %v762_v3 = vpop.eup %761 }
 0x2db   :  { %v591_v4 = vadd.f32 -1.0, %v762_v3 }
 0x2dd   :  { %v441_v5 = vsel %vm440_vm3, %v431_v60, %v591_v4 }
 0x2de   :  { %v442_v6 = vpack.c.bf16 %v441_v5, %v441_v5 }
 0x2e0   :  { %714 = vmatmul.mubr.bf16.vlgmr.msra.gmra.mxu1 %v442_v6 }
 0x3a0   :  { %v548_v7 = vpop.f32.mrf.mxu1 }
 0x3a1   :  { %v549_v8 = vadd.f32 %v592_v0, %v548_v7 }
 0x3a2   :  { %v715_v9 = vpop.f32.mrf.mxu1 }
 0x3a3   :  { %554 = vst [vmem:[%s998_s9] sm:$0xff] %v549_v8 }
 0x3a4   :  { %v551_v10 = vpop.f32.mrf.mxu1 }
 0x3a6   :  { %v716_v11 = vpop.f32.mrf.mxu1 }
 0x3a7   :  { %559 = vsyncpa [#allocation3], 1 }
 0x3a8   :  { %560 = vsyncpa [#allocation5], 1 }
 0x3a9   :  { %561 = vsyncpa [#allocation8], 1 }

// kernel: dense_model_forward.1
= control target key start
LH: loop header
LB: loop body
LE: loop exit
PB: predicated region body
PF: predicated region fallthrough
CT: control target
= control target key end

     0   :  { %14 = vsyncpa [#allocation3], 0  ;;  %s989_s0 = inlined_call_operand.vmem [shape: bf16[8,128], index: 0, kind: input, shape index: {}]   ;;  %s990_s1 = inlined_call_operand.hbm [shape: bf16[128,128], index: 1, kind: input, shape index: {}]   ;;  %s991_s2 = inlined_call_operand.vmem [shape: f32[1,128], index: 2, kind: input, shape index: {}]   ;;  %s992_s3 = inlined_call_operand.hbm [shape: bf16[128,128], index: 3, kind: input, shape index: {}]   ;;  %s993_s4 = inlined_call_operand.vmem [shape: f32[1,128], index: 4, kind: input, shape index: {}]   ;;  %s994_s5 = inlined_call_operand.hbm [shape: bf16[128,128], index: 5, kind: input, shape index: {}]   ;;  %s995_s6 = inlined_call_operand.vmem [shape: f32[1,128], index: 6, kind: input, shape index: {}]   ;;  %s996_s7 = inlined_call_operand.hbm [shape: bf16[128,128], index: 7, kind: input, shape index: {}]   ;;  %s997_s8 = inlined_call_operand.vmem [shape: f32[1,128], index: 8, kind: input, shape index: {}]   ;;  %s998_s9 = inlined_call_operand.vmem [shape: f32[8,128], index: 9, kind: output, shape index: {}]  }
   0x1   :  { %15 = vsyncpa [#allocation5], 0 }
   0x2   :  { %16 = vsyncpa [#allocation8], 0  ;;  %s849_s30 = smov [#allocation4]   ;;  %s850_s11 = smov [#allocation2]  }
   0x3   :  { %s38_s10 = sshll.u32 %s849_s30, 4  ;;  %s24_s12 = sshll.u32 %s850_s11, 4  ;;  %s39_s10 = int_to_ptr.vmem [resolvable:$true] %s38_s10  ;;  %s25_s12 = int_to_ptr.vmem [resolvable:$true] %s24_s12 }
   0x4   :  { %s771_s13 = scalar_lea.vmem %s39_s10, 1024  ;;  %p776_p1 = scmp.lt.s32.totalorder %s39_s10, %s39_s10 }
   0x5   :  { %p772_p0 = scmp.ne.s32.totalorder %s39_s10, %s771_s13  ;;  %p777_p2 = scmp.lt.s32.totalorder %s771_s13, %s771_s13 }
   0x7   :  { %p778_p3 = por %p777_p2, %p776_p1 }
   0x9   :  { %p779_p4 = pnand %p778_p3, %p772_p0 }
   0xb   :  { %782 = shalt.err (!%p779_p4)
}
   0xc   :  { %s851_s14 = smov 64   ;;  %s852_s15 = smov 4  }
   0xd   :  { %44 = dma.hbm_to_vmem [thread:$0]  %s992_s3, 1024, %s39_s10, [#allocation5], %s851_s14, %s851_s14, %s852_s15  }
   0xe   :  { %s791_s18 = scalar_lea.vmem %s25_s12, 1024  ;;  %p796_p6 = scmp.lt.s32.totalorder %s25_s12, %s25_s12 }
   0xf   :  { %p792_p5 = scmp.ne.s32.totalorder %s25_s12, %s791_s18  ;;  %p797_p7 = scmp.lt.s32.totalorder %s791_s18, %s791_s18 }
  0x11   :  { %p798_p8 = por %p797_p7, %p796_p6 }
  0x13   :  { %p799_p9 = pnand %p798_p8, %p792_p5 }
  0x15   :  { %802 = shalt.err (!%p799_p9)
}
  0x16   :  { %30 = dma.hbm_to_vmem [thread:$0]  %s990_s1, 1024, %s25_s12, [#allocation3], %s851_s14, %s851_s14, %s852_s15  }
  0x17   :  { %s853_s21 = smov [#allocation6]   ;;  %s854_s23 = smov [#allocation7]  }
  0x18   :  { %s52_s22 = sshll.u32 %s853_s21, 4  ;;  %s66_s24 = sshll.u32 %s854_s23, 4  ;;  %s53_s22 = int_to_ptr.vmem [resolvable:$true] %s52_s22  ;;  %s67_s24 = int_to_ptr.vmem [resolvable:$true] %s66_s24 }
  0x19   :  { %s811_s3 = scalar_lea.vmem %s53_s22, 1024  ;;  %p816_p11 = scmp.lt.s32.totalorder %s53_s22, %s53_s22 }
  0x1a   :  { %p812_p10 = scmp.ne.s32.totalorder %s53_s22, %s811_s3  ;;  %p817_p12 = scmp.lt.s32.totalorder %s811_s3, %s811_s3 }
  0x1c   :  { %p818_p13 = por %p817_p12, %p816_p11 }
  0x1e   :  { %p819_p0 = pnand %p818_p13, %p812_p10 }
  0x20   :  { %822 = shalt.err (!%p819_p0)
}
  0x21   :  { %58 = dma.hbm_to_vmem [thread:$0]  %s994_s5, 1024, %s53_s22, [#allocation5], %s851_s14, %s851_s14, %s852_s15  }
  0x22   :  { %s831_s1 = scalar_lea.vmem %s67_s24, 1024  ;;  %p836_p2 = scmp.lt.s32.totalorder %s67_s24, %s67_s24 }
  0x23   :  { %p832_p1 = scmp.ne.s32.totalorder %s67_s24, %s831_s1  ;;  %p837_p3 = scmp.lt.s32.totalorder %s831_s1, %s831_s1 }
  0x25   :  { %p838_p4 = por %p837_p3, %p836_p2 }
  0x27   :  { %p839_p5 = pnand %p838_p4, %p832_p1 }
  0x29   :  { %842 = shalt.err (!%p839_p5)
}
  0x2a   :  { %72 = dma.hbm_to_vmem [thread:$0]  %s996_s7, 1024, %s67_s24, [#allocation8], %s851_s14, %s851_s14, %s852_s15  }
  0x2b   :  { %843 = dma.done.wait [#allocation3], 1024  }
  0x2c   :  { %844 = vsyncadd [#allocation3], 4294966272 }
  0x2d   :  { %845 = dma.done.wait [#allocation5], 2048  }
  0x2e   :  { %846 = vsyncadd [#allocation5], 4294965248 }
  0x2f   :  { %847 = dma.done.wait [#allocation8], 1024  }
  0x30   :  { %848 = vsyncadd [#allocation8], 4294966272  ;;  %v855_v0 = vmov 0.0   ;;  %vm856_vm0 = vmmov 0   ;;  %v725_v1 = vld [vmem:[#allocation2 + $0x38] sm:$0xff]   ;;  %v726_v2 = vld [vmem:[#allocation2 + $0x30] sm:$0xff]  }
  0x31   :  { %637 = vmatprep.subr.bf16.mxu0 %v855_v0  ;;  %653 = vmatprep.mubr.msk.bf16.mxu0 %vm856_vm0, %v855_v0  ;;  %v727_v3 = vld [vmem:[#allocation2 + $0x28] sm:$0xff]   ;;  %v733_v4 = vld [vmem:[#allocation4 + $0x38] sm:$0xff]   ;;  %v728_v5 = vld [vmem:[#allocation2 + $0x20] sm:$0xff]  }
  0x32   :  { %657 = vmatprep.subr.bf16.mxu1 %v855_v0  ;;  %673 = vmatprep.mubr.msk.bf16.mxu1 %vm856_vm0, %v855_v0  ;;  %v734_v6 = vld [vmem:[#allocation4 + $0x30] sm:$0xff]   ;;  %v729_v7 = vld [vmem:[#allocation2 + $0x18] sm:$0xff]   ;;  %v731_v9 = vld [vmem:[#allocation2 + $0x8] sm:$0xff]  }
  0x33   :  { %638 = vmatpush3.bf16.msra.mxu0 %v725_v1  ;;  %658 = vmatpush3.bf16.msra.mxu1 %v733_v4  ;;  %v730_v8 = vld [vmem:[#allocation2 + $0x10] sm:$0xff]   ;;  %v732_v10 = vld [vmem:[#allocation2] sm:$0xff]   ;;  %v735_v12 = vld [vmem:[#allocation4 + $0x28] sm:$0xff]  }
  0x34   :  { %639 = vmatprep.subr.bf16.mxu0 %v855_v0  ;;  %659 = vmatprep.subr.bf16.mxu1 %v855_v0  ;;  %v88_v11 = vld [vmem:[%s989_s0] sm:$0xf]  ;;  %v737_v14 = vld [vmem:[#allocation4 + $0x18] sm:$0xff]   ;;  %v738_v15 = vld [vmem:[#allocation4 + $0x10] sm:$0xff]  }
  0x35   :  { %v736_v13 = vld [vmem:[#allocation4 + $0x20] sm:$0xff]   ;;  %v739_v16 = vld [vmem:[#allocation4 + $0x8] sm:$0xff]   ;;  %v741_v18 = vld [vmem:[#allocation6 + $0x38] sm:$0xff]  }
  0x36   :  { %v740_v17 = vld [vmem:[#allocation4] sm:$0xff]   ;;  %v742_v19 = vld [vmem:[#allocation6 + $0x30] sm:$0xff]   ;;  %v743_v32 = vld [vmem:[#allocation6 + $0x28] sm:$0xff]  }
  0x37   :  { %640 = vmatpush3.bf16.msra.mxu0 %v726_v2  ;;  %660 = vmatpush3.bf16.msra.mxu1 %v734_v6  ;;  %v562_v20 = vld [vmem:[%s991_s2] ss:$0 sm:$0xff]  ;;  %v745_v34 = vld [vmem:[#allocation6 + $0x18] sm:$0xff]   ;;  %v746_v35 = vld [vmem:[#allocation6 + $0x10] sm:$0xff]  }
  0x38   :  { %641 = vmatprep.subr.bf16.mxu0 %v855_v0  ;;  %661 = vmatprep.subr.bf16.mxu1 %v855_v0  ;;  %v744_v33 = vld [vmem:[#allocation6 + $0x20] sm:$0xff]   ;;  %v747_v36 = vld [vmem:[#allocation6 + $0x8] sm:$0xff]   ;;  %v749_v38 = vld [vmem:[#allocation7 + $0x38] sm:$0xff]  }
  0x39   :  { %v748_v37 = vld [vmem:[#allocation6] sm:$0xff]   ;;  %v750_v39 = vld [vmem:[#allocation7 + $0x30] sm:$0xff]   ;;  %v751_v52 = vld [vmem:[#allocation7 + $0x28] sm:$0xff]  }
  0x3a   :  { %v572_v40 = vld [vmem:[%s993_s4] ss:$0 sm:$0xff]  ;;  %v753_v54 = vld [vmem:[#allocation7 + $0x18] sm:$0xff]   ;;  %v754_v55 = vld [vmem:[#allocation7 + $0x10] sm:$0xff]  }
  0x3b   :  { %642 = vmatpush3.bf16.msra.mxu0 %v727_v3  ;;  %662 = vmatpush3.bf16.msra.mxu1 %v735_v12  ;;  %v752_v53 = vld [vmem:[#allocation7 + $0x20] sm:$0xff]   ;;  %v755_v56 = vld [vmem:[#allocation7 + $0x8] sm:$0xff]  }
  0x3c   :  { %643 = vmatprep.subr.bf16.mxu0 %v855_v0  ;;  %663 = vmatprep.subr.bf16.mxu1 %v855_v0  ;;  %v756_v57 = vld [vmem:[#allocation7] sm:$0xff]  }
  0x3d   :  { %v582_v58 = vld [vmem:[%s995_s6] ss:$0 sm:$0xff] }
  0x3f   :  { %644 = vmatpush3.bf16.msra.mxu0 %v728_v5  ;;  %664 = vmatpush3.bf16.msra.mxu1 %v736_v13 }
  0x40   :  { %645 = vmatprep.subr.bf16.mxu0 %v855_v0  ;;  %665 = vmatprep.subr.bf16.mxu1 %v855_v0 }
  0x43   :  { %646 = vmatpush3.bf16.msra.mxu0 %v729_v7  ;;  %666 = vmatpush3.bf16.msra.mxu1 %v737_v14 }
  0x44   :  { %647 = vmatprep.subr.bf16.mxu0 %v855_v0  ;;  %667 = vmatprep.subr.bf16.mxu1 %v855_v0 }
  0x47   :  { %648 = vmatpush3.bf16.msra.mxu0 %v730_v8  ;;  %668 = vmatpush3.bf16.msra.mxu1 %v738_v15 }
  0x48   :  { %649 = vmatprep.subr.bf16.mxu0 %v855_v0  ;;  %669 = vmatprep.subr.bf16.mxu1 %v855_v0 }
  0x4b   :  { %650 = vmatpush3.bf16.msra.mxu0 %v731_v9  ;;  %670 = vmatpush3.bf16.msra.mxu1 %v739_v16 }
  0x4c   :  { %651 = vmatprep.subr.bf16.mxu0 %v855_v0  ;;  %671 = vmatprep.subr.bf16.mxu1 %v855_v0 }
  0x4f   :  { %652 = vmatpush3.bf16.msra.mxu0 %v732_v10  ;;  %672 = vmatpush3.bf16.msra.mxu1 %v740_v17 }
  0x50   :  { %677 = vmatprep.subr.bf16.mxu0 %v855_v0  ;;  %697 = vmatprep.subr.bf16.mxu1 %v855_v0 }
  0x52   :  { %654 = vmatmul.mubr.bf16.vlgmr.msra.gmra.mxu0 %v88_v11 }
  0x53   :  { %693 = vmatprep.mubr.msk.bf16.mxu0 %vm856_vm0, %v855_v0  ;;  %678 = vmatpush3.bf16.msra.mxu0 %v741_v18 }
  0x54   :  { %679 = vmatprep.subr.bf16.mxu0 %v855_v0 }
  0x57   :  { %680 = vmatpush3.bf16.msra.mxu0 %v742_v19 }
  0x58   :  { %681 = vmatprep.subr.bf16.mxu0 %v855_v0 }
  0x5b   :  { %682 = vmatpush3.bf16.msra.mxu0 %v743_v32 }
  0x5c   :  { %683 = vmatprep.subr.bf16.mxu0 %v855_v0 }
  0x5f   :  { %684 = vmatpush3.bf16.msra.mxu0 %v744_v33 }
  0x60   :  { %685 = vmatprep.subr.bf16.mxu0 %v855_v0 }
  0x63   :  { %686 = vmatpush3.bf16.msra.mxu0 %v745_v34 }
  0x64   :  { %687 = vmatprep.subr.bf16.mxu0 %v855_v0 }
  0x67   :  { %688 = vmatpush3.bf16.msra.mxu0 %v746_v35 }
  0x68   :  { %689 = vmatprep.subr.bf16.mxu0 %v855_v0 }
  0x6b   :  { %690 = vmatpush3.bf16.msra.mxu0 %v747_v36 }
  0x6c   :  { %691 = vmatprep.subr.bf16.mxu0 %v855_v0 }
  0x6f   :  { %692 = vmatpush3.bf16.msra.mxu0 %v748_v37 }
 0x112   :  { %v194_v21 = vpop.f32.mrf.mxu0 }
 0x113   :  { %v195_v22 = vadd.f32 %v562_v20, %v194_v21 }
 0x114   :  { %v655_v23 = vpop.f32.mrf.mxu0 }
 0x115   :  { %v200_v24 = vmin.f32 %v195_v22, 0.0  ;;  %vm204_vm1 = vcmp.gt.f32.partialorder %v195_v22, 0.0 }
 0x116   :  { %v197_v25 = vpop.f32.mrf.mxu0 }
 0x117   :  { %v201_v26 = vmul.f32 1.442695, %v200_v24 }
 0x118   :  { %v656_v27 = vpop.f32.mrf.mxu0 }
 0x119   :  { %757 = vpow2.f32 %v201_v26 }
 0x126   :  { %v758_v28 = vpop.eup %757 }
 0x127   :  { %v571_v29 = vadd.f32 -1.0, %v758_v28 }
 0x129   :  { %v205_v30 = vsel %vm204_vm1, %v195_v22, %v571_v29 }
 0x12a   :  { %v206_v31 = vpack.c.bf16 %v205_v30, %v205_v30 }
 0x12c   :  { %674 = vmatmul.mubr.bf16.vlgmr.msra.gmra.mxu1 %v206_v31 }
 0x12d   :  { %713 = vmatprep.mubr.msk.bf16.mxu1 %vm856_vm0, %v855_v0  ;;  %698 = vmatpush3.bf16.msra.mxu1 %v749_v38 }
 0x12e   :  { %699 = vmatprep.subr.bf16.mxu1 %v855_v0 }
 0x131   :  { %700 = vmatpush3.bf16.msra.mxu1 %v750_v39 }
 0x132   :  { %701 = vmatprep.subr.bf16.mxu1 %v855_v0 }
 0x135   :  { %702 = vmatpush3.bf16.msra.mxu1 %v751_v52 }
 0x136   :  { %703 = vmatprep.subr.bf16.mxu1 %v855_v0 }
 0x139   :  { %704 = vmatpush3.bf16.msra.mxu1 %v752_v53 }
 0x13a   :  { %705 = vmatprep.subr.bf16.mxu1 %v855_v0 }
 0x13d   :  { %706 = vmatpush3.bf16.msra.mxu1 %v753_v54 }
 0x13e   :  { %707 = vmatprep.subr.bf16.mxu1 %v855_v0 }
 0x141   :  { %708 = vmatpush3.bf16.msra.mxu1 %v754_v55 }
 0x142   :  { %709 = vmatprep.subr.bf16.mxu1 %v855_v0 }
 0x145   :  { %710 = vmatpush3.bf16.msra.mxu1 %v755_v56 }
 0x146   :  { %711 = vmatprep.subr.bf16.mxu1 %v855_v0  ;;  %v592_v0 = vld [vmem:[%s997_s8] ss:$0 sm:$0xff] }
 0x149   :  { %712 = vmatpush3.bf16.msra.mxu1 %v756_v57 }
 0x1ec   :  { %v312_v41 = vpop.f32.mrf.mxu1 }
 0x1ed   :  { %v313_v42 = vadd.f32 %v572_v40, %v312_v41 }
 0x1ee   :  { %v675_v43 = vpop.f32.mrf.mxu1 }
 0x1ef   :  { %v318_v44 = vmin.f32 %v313_v42, 0.0  ;;  %vm322_vm2 = vcmp.gt.f32.partialorder %v313_v42, 0.0 }
 0x1f0   :  { %v315_v45 = vpop.f32.mrf.mxu1 }
 0x1f1   :  { %v319_v46 = vmul.f32 1.442695, %v318_v44 }
 0x1f2   :  { %v676_v47 = vpop.f32.mrf.mxu1 }
 0x1f3   :  { %759 = vpow2.f32 %v319_v46 }
 0x200   :  { %v760_v48 = vpop.eup %759 }
 0x201   :  { %v581_v49 = vadd.f32 -1.0, %v760_v48 }
 0x203   :  { %v323_v50 = vsel %vm322_vm2, %v313_v42, %v581_v49 }
 0x204   :  { %v324_v51 = vpack.c.bf16 %v323_v50, %v323_v50 }
 0x206   :  { %694 = vmatmul.mubr.bf16.vlgmr.msra.gmra.mxu0 %v324_v51 }
 0x2c6   :  { %v430_v59 = vpop.f32.mrf.mxu0 }
 0x2c7   :  { %v431_v60 = vadd.f32 %v582_v58, %v430_v59 }
 0x2c8   :  { %v695_v61 = vpop.f32.mrf.mxu0 }
 0x2c9   :  { %v436_v62 = vmin.f32 %v431_v60, 0.0  ;;  %vm440_vm3 = vcmp.gt.f32.partialorder %v431_v60, 0.0 }
 0x2ca   :  { %v433_v63 = vpop.f32.mrf.mxu0 }
 0x2cb   :  { %v437_v1 = vmul.f32 1.442695, %v436_v62 }
 0x2cc   :  { %v696_v2 = vpop.f32.mrf.mxu0 }
 0x2cd   :  { %761 = vpow2.f32 %v437_v1 }
 0x2da   :  { %v762_v3 = vpop.eup %761 }
 0x2db   :  { %v591_v4 = vadd.f32 -1.0, %v762_v3 }
 0x2dd   :  { %v441_v5 = vsel %vm440_vm3, %v431_v60, %v591_v4 }
 0x2de   :  { %v442_v6 = vpack.c.bf16 %v441_v5, %v441_v5 }
 0x2e0   :  { %714 = vmatmul.mubr.bf16.vlgmr.msra.gmra.mxu1 %v442_v6 }
 0x3a0   :  { %v548_v7 = vpop.f32.mrf.mxu1 }
 0x3a1   :  { %v549_v8 = vadd.f32 %v592_v0, %v548_v7 }
 0x3a2   :  { %v715_v9 = vpop.f32.mrf.mxu1 }
 0x3a3   :  { %554 = vst [vmem:[%s998_s9] sm:$0xff] %v549_v8 }
 0x3a4   :  { %v551_v10 = vpop.f32.mrf.mxu1 }
 0x3a6   :  { %v716_v11 = vpop.f32.mrf.mxu1 }
 0x3a7   :  { %559 = vsyncpa [#allocation3], 1 }
 0x3a8   :  { %560 = vsyncpa [#allocation5], 1 }
 0x3a9   :  { %561 = vsyncpa [#allocation8], 1 }

</bundles_post_ra>
